<compile_context>
chip_gen: v7x
topology: tpu7x:2x2x1
jax: 0.10.0
libtpu: 0.0.40
codegen_flags: <defaults>
</compile_context>

<pallas_src>
import functools

import jax
import jax.numpy as jnp
from jax.experimental import pallas as pl
from jax.experimental.pallas import tpu as pltpu

EPS = 1e-5


def _round_up(a, b):
    return (a + b - 1) // b * b


# ---------------------------------------------------------------------------
# Pass 1: per-channel batch statistics (sum / sum-of-squares over nodes)
# ---------------------------------------------------------------------------
def _bn_stats_kernel(x_ref, mean_ref, inv_std_ref, sum_acc, sq_acc,
                     *, n_valid, c, eps):
    i = pl.program_id(0)

    @pl.when(i == 0)
    def _():
        sum_acc[...] = jnp.zeros_like(sum_acc)
        sq_acc[...] = jnp.zeros_like(sq_acc)

    xb = x_ref[...].astype(jnp.float32)                     # (TILE, L)
    sum_acc[...] += jnp.sum(xb, axis=0, keepdims=True)      # (1, L)
    sq_acc[...] += jnp.sum(xb * xb, axis=0, keepdims=True)  # (1, L)

    @pl.when(i == pl.num_programs(0) - 1)
    def _():
        L = sum_acc.shape[-1]
        # Lane-group combine matrix: M[k, j] = 1 iff k == j (mod C).
        # sums @ M adds the G = L // C folded groups together and leaves the
        # per-channel total replicated across every lane group — exactly the
        # broadcast layout pass 2 consumes.  One tiny MXU op, executed once.
        rows = jax.lax.broadcasted_iota(jnp.int32, (L, L), 0) % c
        cols = jax.lax.broadcasted_iota(jnp.int32, (L, L), 1) % c
        comb = (rows == cols).astype(jnp.float32)
        tot = jnp.dot(sum_acc[...], comb, preferred_element_type=jnp.float32)
        tot_sq = jnp.dot(sq_acc[...], comb, preferred_element_type=jnp.float32)

        inv_n = 1.0 / float(n_valid)
        mean = tot * inv_n
        # Single-pass biased variance; f32 accumulation, clamped for safety.
        var = jnp.maximum(tot_sq * inv_n - mean * mean, 0.0)
        mean_ref[...] = mean
        inv_std_ref[...] = jax.lax.rsqrt(var + eps)


# ---------------------------------------------------------------------------
# Pass 2: fused normalize -> relu -> shared dropout (elementwise, parallel)
# ---------------------------------------------------------------------------
def _bn_apply_kernel(x_ref, mask_ref, gamma_ref, beta_ref, mean_ref,
                     inv_std_ref, out_ref, *, inv_keep_p):
    xb = x_ref[...].astype(jnp.float32)
    scale = inv_std_ref[...] * gamma_ref[...]          # (1, L)
    shift = beta_ref[...] - mean_ref[...] * scale      # (1, L)
    y = xb * scale + shift                             # BatchNorm affine
    y = jnp.maximum(y, 0.0)                            # ReLU
    keep = mask_ref[...].astype(jnp.float32)           # int8 {0,1} -> f32
    y = y * (keep * inv_keep_p)                        # SharedDropout
    out_ref[...] = y.astype(out_ref.dtype)


# ---------------------------------------------------------------------------
# Wrapper
# ---------------------------------------------------------------------------
def basic_block_forward(x, gamma, beta, keep_mask, keep_p, eps=EPS,
                        max_tile_rows=2048):
    """BasicBlock forward (minus external gcn): BN(train) -> relu -> dropout.

    x:          (N, C) node features (any float dtype; stats computed in f32)
    gamma/beta: (C,) BatchNorm1d affine parameters
    keep_mask:  (N, C) {0,1} keep mask (bool/int8); scaled by 1/keep_p in-kernel
    keep_p:     dropout keep probability (Python float)
    """
    N, C = x.shape

    # Lane-fold (N, C) -> (N/G, G*C) so the last dim fills the 128-lane vreg.
    G = 128 // C if (C <= 128 and 128 % C == 0 and N % (128 // C) == 0) else 1
    L = G * C
    Nf = N // G

    # Tile rows: multiple of 32 (native int8 sublane tile); pad folded rows so
    # the tile divides evenly.  Zero padding is stats-safe: it adds 0 to
    # sum/sumsq and we divide by the true node count N.
    tile = min(max_tile_rows, _round_up(Nf, 32))
    Np = _round_up(Nf, tile)
    T = Np // tile

    xf = x.reshape(Nf, L)
    mf = keep_mask.astype(jnp.int8).reshape(Nf, L)
    if Np != Nf:
        xf = jnp.pad(xf, ((0, Np - Nf), (0, 0)))
        mf = jnp.pad(mf, ((0, Np - Nf), (0, 0)))

    gamma_t = jnp.tile(gamma.astype(jnp.float32).reshape(1, C), (1, G))
    beta_t = jnp.tile(beta.astype(jnp.float32).reshape(1, C), (1, G))

    vmem_limit = 32 * 1024 * 1024  # safe on v5e/v6e/v7x; tiles need << 10 MiB

    # ---- pass 1: per-channel mean / inv_std ------------------------------
    mean, inv_std = pl.pallas_call(
        functools.partial(_bn_stats_kernel, n_valid=N, c=C, eps=eps),
        out_shape=(jax.ShapeDtypeStruct((1, L), jnp.float32),
                   jax.ShapeDtypeStruct((1, L), jnp.float32)),
        grid_spec=pltpu.PrefetchScalarGridSpec(
            num_scalar_prefetch=0,
            grid=(T,),
            in_specs=[pl.BlockSpec((tile, L), lambda i: (i, 0))],
            out_specs=(pl.BlockSpec((1, L), lambda i: (0, 0)),
                       pl.BlockSpec((1, L), lambda i: (0, 0))),
            scratch_shapes=[pltpu.VMEM((1, L), jnp.float32),
                            pltpu.VMEM((1, L), jnp.float32)]),
        compiler_params=pltpu.CompilerParams(
            dimension_semantics=("arbitrary",),
            vmem_limit_bytes=vmem_limit),
    )(xf)

    # ---- pass 2: normalize + relu + dropout (parallel over node tiles) ---
    out_f = pl.pallas_call(
        functools.partial(_bn_apply_kernel, inv_keep_p=1.0 / float(keep_p)),
        out_shape=jax.ShapeDtypeStruct((Np, L), x.dtype),
        grid=(T,),
        in_specs=[
            pl.BlockSpec((tile, L), lambda i: (i, 0)),   # x (lane-folded)
            pl.BlockSpec((tile, L), lambda i: (i, 0)),   # keep mask (int8)
            pl.BlockSpec((1, L), lambda i: (0, 0)),      # gamma (lane-tiled)
            pl.BlockSpec((1, L), lambda i: (0, 0)),      # beta  (lane-tiled)
            pl.BlockSpec((1, L), lambda i: (0, 0)),      # mean
            pl.BlockSpec((1, L), lambda i: (0, 0)),      # inv_std
        ],
        out_specs=pl.BlockSpec((tile, L), lambda i: (i, 0)),
        compiler_params=pltpu.CompilerParams(
            dimension_semantics=("parallel",),
            vmem_limit_bytes=vmem_limit),
    )(xf, mf, gamma_t, beta_t, mean, inv_std)

    return out_f[:Nf].reshape(N, C)


# ---------------------------------------------------------------------------
# Pure-JAX reference
# ---------------------------------------------------------------------------
def reference_forward(x, gamma, beta, keep_mask, keep_p, eps=EPS):
    x32 = x.astype(jnp.float32)
    mean = jnp.mean(x32, axis=0, keepdims=True)
    var = jnp.mean((x32 - mean) ** 2, axis=0, keepdims=True)
    y = (x32 - mean) * jax.lax.rsqrt(var + eps) * gamma[None, :] + beta[None, :]
    y = jnp.maximum(y, 0.0)
    y = y * keep_mask.astype(jnp.float32) / keep_p
    return y.astype(x.dtype)


if __name__ == "__main__":
    key = jax.random.PRNGKey(0)
    k_x, k_g, k_b, k_m = jax.random.split(key, 4)

    N, C = 64, 32                       # small: 64 nodes, 32 in_channels
    x = jax.random.normal(k_x, (N, C), dtype=jnp.float32)

    # BatchNorm1d affine weight/bias.
    gamma = 1.0 + 0.1 * jax.random.normal(k_g, (C,), dtype=jnp.float32)
    beta = 0.1 * jax.random.normal(k_b, (C,), dtype=jnp.float32)

    # SharedDropout keep mask (p = 0.5), passed unscaled as {0,1}.
    keep_p = 0.5
    keep_mask = jax.random.bernoulli(k_m, keep_p, (N, C))

    out = basic_block_forward(x, gamma, beta, keep_mask, keep_p)
    out = jax.block_until_ready(out)

    ref = reference_forward(x, gamma, beta, keep_mask, keep_p)
    assert out.shape == (N, C)
    assert jnp.allclose(out, ref, atol=1e-4, rtol=1e-4), (
        float(jnp.max(jnp.abs(out - ref))))

    print("KERNEL_OK")
</pallas_src>

<mosaic_0001>
module attributes {stable_mosaic.version = 11 : i64} {
  func.func @_bn_stats_kernel(%arg0: i32, %arg1: memref<32x128xf32, #tpu.memory_space<vmem>>, %arg2: memref<1x128xf32, #tpu.memory_space<vmem>>, %arg3: memref<1x128xf32, #tpu.memory_space<vmem>>, %arg4: memref<1x128xf32, #tpu.memory_space<vmem>>, %arg5: memref<1x128xf32, #tpu.memory_space<vmem>>) attributes {dimension_semantics = [#tpu.dimension_semantics<arbitrary>], iteration_bounds = array<i64: 1>, scalar_prefetch = 0 : i64, scratch_operands = 2 : i64, tpu.core_type = #tpu.core_type<tc>, window_params = [{transform_indices = @transform_0, window_bounds = array<i64: 32, 128>}, {pipeline_mode = #tpu.pipeline_mode<synchronous>, transform_indices = @transform_1, window_bounds = array<i64: 1, 128>}, {pipeline_mode = #tpu.pipeline_mode<synchronous>, transform_indices = @transform_2, window_bounds = array<i64: 1, 128>}]} {
    %c0_i32 = arith.constant 0 : i32
    %0 = arith.cmpi eq, %arg0, %c0_i32 : i32
    %1 = arith.extui %0 : i1 to i32
    %c0_i32_0 = arith.constant 0 : i32
    %2 = arith.cmpi ne, %1, %c0_i32_0 : i32
    scf.if %2 {
      %cst_13 = arith.constant 0.000000e+00 : f32
      %18 = vector.broadcast %cst_13 : f32 to vector<1x128xf32>
      %c0_14 = arith.constant 0 : index
      %c0_15 = arith.constant 0 : index
      %19 = vector.load %arg4[%c0_14, %c0_15] : memref<1x128xf32, #tpu.memory_space<vmem>>, vector<1x128xf32>
      tpu.vector_store %arg4[%c0_14, %c0_15], %18 {strides = array<i32>} : memref<1x128xf32, #tpu.memory_space<vmem>>, vector<1x128xf32>,
      %cst_16 = arith.constant 0.000000e+00 : f32
      %20 = vector.broadcast %cst_16 : f32 to vector<1x128xf32>
      %c0_17 = arith.constant 0 : index
      %c0_18 = arith.constant 0 : index
      %21 = vector.load %arg5[%c0_17, %c0_18] : memref<1x128xf32, #tpu.memory_space<vmem>>, vector<1x128xf32>
      tpu.vector_store %arg5[%c0_17, %c0_18], %20 {strides = array<i32>} : memref<1x128xf32, #tpu.memory_space<vmem>>, vector<1x128xf32>,
    } else {
    }
    %c0 = arith.constant 0 : index
    %c0_1 = arith.constant 0 : index
    %3 = vector.load %arg1[%c0, %c0_1] : memref<32x128xf32, #tpu.memory_space<vmem>>, vector<32x128xf32>
    %c0_2 = arith.constant 0 : index
    %c0_3 = arith.constant 0 : index
    %4 = vector.load %arg4[%c0_2, %c0_3] : memref<1x128xf32, #tpu.memory_space<vmem>>, vector<1x128xf32>
    %cst = arith.constant dense<0.000000e+00> : vector<128xf32>
    %5 = vector.multi_reduction <add>, %3, %cst [0] : vector<32x128xf32> to vector<128xf32>
    %6 = vector.shape_cast %5 : vector<128xf32> to vector<1x128xf32>
    %7 = arith.addf %4, %6 : vector<1x128xf32>
    %c0_4 = arith.constant 0 : index
    %c0_5 = arith.constant 0 : index
    %8 = vector.load %arg4[%c0_4, %c0_5] : memref<1x128xf32, #tpu.memory_space<vmem>>, vector<1x128xf32>
    tpu.vector_store %arg4[%c0_4, %c0_5], %7 {strides = array<i32>} : memref<1x128xf32, #tpu.memory_space<vmem>>, vector<1x128xf32>,
    %c0_6 = arith.constant 0 : index
    %c0_7 = arith.constant 0 : index
    %9 = vector.load %arg5[%c0_6, %c0_7] : memref<1x128xf32, #tpu.memory_space<vmem>>, vector<1x128xf32>
    %10 = arith.mulf %3, %3 : vector<32x128xf32>
    %cst_8 = arith.constant dense<0.000000e+00> : vector<128xf32>
    %11 = vector.multi_reduction <add>, %10, %cst_8 [0] : vector<32x128xf32> to vector<128xf32>
    %12 = vector.shape_cast %11 : vector<128xf32> to vector<1x128xf32>
    %13 = arith.addf %9, %12 : vector<1x128xf32>
    %c0_9 = arith.constant 0 : index
    %c0_10 = arith.constant 0 : index
    %14 = vector.load %arg5[%c0_9, %c0_10] : memref<1x128xf32, #tpu.memory_space<vmem>>, vector<1x128xf32>
    tpu.vector_store %arg5[%c0_9, %c0_10], %13 {strides = array<i32>} : memref<1x128xf32, #tpu.memory_space<vmem>>, vector<1x128xf32>,
    %c0_i32_11 = arith.constant 0 : i32
    %15 = arith.cmpi eq, %arg0, %c0_i32_11 : i32
    %16 = arith.extui %15 : i1 to i32
    %c0_i32_12 = arith.constant 0 : i32
    %17 = arith.cmpi ne, %16, %c0_i32_12 : i32
    scf.if %17 {
      %18 = tpu.iota {dimensions = array<i32: 0>} : vector<128x128xi32>
      %c32_i32 = arith.constant 32 : i32
      %c0_i32_13 = arith.constant 0 : i32
      %19 = arith.cmpi eq, %c32_i32, %c0_i32_13 : i32
      %c1_i32 = arith.constant 1 : i32
      %20 = arith.select %19, %c1_i32, %c32_i32 : i32
      %21 = vector.broadcast %20 : i32 to vector<128x128xi32>
      %22 = arith.remsi %18, %21 : vector<128x128xi32>
      %c0_i32_14 = arith.constant 0 : i32
      %23 = vector.broadcast %c0_i32_14 : i32 to vector<128x128xi32>
      %24 = arith.cmpi ne, %22, %23 : vector<128x128xi32>
      %c0_i32_15 = arith.constant 0 : i32
      %25 = vector.broadcast %c0_i32_15 : i32 to vector<128x128xi32>
      %26 = arith.cmpi slt, %22, %25 : vector<128x128xi32>
      %c0_i32_16 = arith.constant 0 : i32
      %27 = arith.cmpi slt, %20, %c0_i32_16 : i32
      %28 = vector.broadcast %27 : i1 to vector<128x128xi1>
      %29 = vector.broadcast %28 : vector<128x128xi1> to vector<128x128xi1>
      %30 = arith.xori %26, %29 : vector<128x128xi1>
      %31 = arith.andi %30, %24 : vector<128x128xi1>
      %32 = vector.broadcast %20 : i32 to vector<128x128xi32>
      %33 = arith.addi %22, %32 : vector<128x128xi32>
      %34 = arith.select %31, %33, %22 : vector<128x128xi1>, vector<128x128xi32>
      %35 = tpu.iota {dimensions = array<i32: 1>} : vector<128x128xi32>
      %c32_i32_17 = arith.constant 32 : i32
      %c0_i32_18 = arith.constant 0 : i32
      %36 = arith.cmpi eq, %c32_i32_17, %c0_i32_18 : i32
      %c1_i32_19 = arith.constant 1 : i32
      %37 = arith.select %36, %c1_i32_19, %c32_i32_17 : i32
      %38 = vector.broadcast %37 : i32 to vector<128x128xi32>
      %39 = arith.remsi %35, %38 : vector<128x128xi32>
      %c0_i32_20 = arith.constant 0 : i32
      %40 = vector.broadcast %c0_i32_20 : i32 to vector<128x128xi32>
      %41 = arith.cmpi ne, %39, %40 : vector<128x128xi32>
      %c0_i32_21 = arith.constant 0 : i32
      %42 = vector.broadcast %c0_i32_21 : i32 to vector<128x128xi32>
      %43 = arith.cmpi slt, %39, %42 : vector<128x128xi32>
      %c0_i32_22 = arith.constant 0 : i32
      %44 = arith.cmpi slt, %37, %c0_i32_22 : i32
      %45 = vector.broadcast %44 : i1 to vector<128x128xi1>
      %46 = vector.broadcast %45 : vector<128x128xi1> to vector<128x128xi1>
      %47 = arith.xori %43, %46 : vector<128x128xi1>
      %48 = arith.andi %47, %41 : vector<128x128xi1>
      %49 = vector.broadcast %37 : i32 to vector<128x128xi32>
      %50 = arith.addi %39, %49 : vector<128x128xi32>
      %51 = arith.select %48, %50, %39 : vector<128x128xi1>, vector<128x128xi32>
      %52 = arith.cmpi eq, %34, %51 : vector<128x128xi32>
      %53 = arith.extui %52 : vector<128x128xi1> to vector<128x128xi32>
      %54 = arith.sitofp %53 : vector<128x128xi32> to vector<128x128xf32>
      %c0_23 = arith.constant 0 : index
      %c0_24 = arith.constant 0 : index
      %55 = vector.load %arg4[%c0_23, %c0_24] : memref<1x128xf32, #tpu.memory_space<vmem>>, vector<1x128xf32>
      %cst_25 = arith.constant dense<0.000000e+00> : vector<1x128xf32>
      %56 = tpu.matmul %55, %54, %cst_25 {dimension_numbers = #tpu.dot_dimension_numbers<[1], [0], [0], [1], [0, 0, 1, 1], [], []>} : vector<1x128xf32>, vector<128x128xf32>, vector<1x128xf32> -> vector<1x128xf32>
      %c0_26 = arith.constant 0 : index
      %c0_27 = arith.constant 0 : index
      %57 = vector.load %arg5[%c0_26, %c0_27] : memref<1x128xf32, #tpu.memory_space<vmem>>, vector<1x128xf32>
      %cst_28 = arith.constant dense<0.000000e+00> : vector<1x128xf32>
      %58 = tpu.matmul %57, %54, %cst_28 {dimension_numbers = #tpu.dot_dimension_numbers<[1], [0], [0], [1], [0, 0, 1, 1], [], []>} : vector<1x128xf32>, vector<128x128xf32>, vector<1x128xf32> -> vector<1x128xf32>
      %cst_29 = arith.constant 1.562500e-02 : f32
      %59 = vector.broadcast %cst_29 : f32 to vector<1x128xf32>
      %60 = arith.mulf %56, %59 : vector<1x128xf32>
      %cst_30 = arith.constant 1.562500e-02 : f32
      %61 = vector.broadcast %cst_30 : f32 to vector<1x128xf32>
      %62 = arith.mulf %58, %61 : vector<1x128xf32>
      %63 = arith.mulf %60, %60 : vector<1x128xf32>
      %64 = arith.subf %62, %63 : vector<1x128xf32>
      %cst_31 = arith.constant 0.000000e+00 : f32
      %65 = vector.broadcast %cst_31 : f32 to vector<1x128xf32>
      %66 = arith.maximumf %64, %65 : vector<1x128xf32>
      %c0_32 = arith.constant 0 : index
      %c0_33 = arith.constant 0 : index
      %67 = vector.load %arg2[%c0_32, %c0_33] : memref<1x128xf32, #tpu.memory_space<vmem>>, vector<1x128xf32>
      tpu.vector_store %arg2[%c0_32, %c0_33], %60 {strides = array<i32>} : memref<1x128xf32, #tpu.memory_space<vmem>>, vector<1x128xf32>,
      %cst_34 = arith.constant 9.99999974E-6 : f32
      %68 = vector.broadcast %cst_34 : f32 to vector<1x128xf32>
      %69 = arith.addf %66, %68 : vector<1x128xf32>
      %70 = math.rsqrt %69 : vector<1x128xf32>
      %c0_35 = arith.constant 0 : index
      %c0_36 = arith.constant 0 : index
      %71 = vector.load %arg3[%c0_35, %c0_36] : memref<1x128xf32, #tpu.memory_space<vmem>>, vector<1x128xf32>
      tpu.vector_store %arg3[%c0_35, %c0_36], %70 {strides = array<i32>} : memref<1x128xf32, #tpu.memory_space<vmem>>, vector<1x128xf32>,
    } else {
    }
    return
  }
  func.func @transform_0(%arg0: i32) -> (i32, i32) {
    %c0_i32 = arith.constant 0 : i32
    %c0_i32_0 = arith.constant 0 : i32
    return %arg0, %c0_i32 : i32, i32
  }
  func.func @transform_1(%arg0: i32) -> (i32, i32) {
    %c0_i32 = arith.constant 0 : i32
    %c0_i32_0 = arith.constant 0 : i32
    %c0_i32_1 = arith.constant 0 : i32
    return %c0_i32, %c0_i32_0 : i32, i32
  }
  func.func @transform_2(%arg0: i32) -> (i32, i32) {
    %c0_i32 = arith.constant 0 : i32
    %c0_i32_0 = arith.constant 0 : i32
    %c0_i32_1 = arith.constant 0 : i32
    return %c0_i32, %c0_i32_0 : i32, i32
  }
}

</mosaic_0001>

<bundles_post_ra>
// kernel: tpu_custom_call.1
= control target key start
LH: loop header
LB: loop body
LE: loop exit
PB: predicated region body
PF: predicated region fallthrough
CT: control target
= control target key end

     0   :  { %8 = vsyncpa [#allocation5], 0  ;;  %s1001_s0 = inlined_call_operand.hbm [shape: f32[32,128], index: 0, kind: input, shape index: {}]   ;;  %s1002_s1 = inlined_call_operand.hbm [shape: f32[1,128], index: 1, kind: output, shape index: {0}]   ;;  %s1003_s2 = inlined_call_operand.hbm [shape: f32[1,128], index: 2, kind: output, shape index: {1}]  }
   0x1   :  { %9 = vsyncpa [#allocation6], 0 }
   0x2   :  { %10 = vsyncpa [#allocation9], 0  ;;  %s801_s9 = smov [#allocation4]   ;;  %s729_s13 = scalar_lea.hbm %s1001_s0, 512 }
   0x3   :  { %s16_s10 = sshll.u32 %s801_s9, 4  ;;  %p730_p0 = scmp.ne.s32.totalorder %s1001_s0, %s729_s13  ;;  %s17_s10 = int_to_ptr.vmem [resolvable:$true] %s16_s10 }
   0x4   :  { %p733_p1 = scmp.lt.u32.totalorder %s729_s13, %s1001_s0 }
   0x6   :  { %p735_p2 = pnand %p733_p1, %p730_p0 }
   0x8   :  { %738 = shalt.err (!%p735_p2)
}
   0x9   :  { %s739_s18 = scalar_lea.vmem %s17_s10, 512  ;;  %p744_p4 = scmp.lt.s32.totalorder %s17_s10, %s17_s10 }
   0xa   :  { %p740_p3 = scmp.ne.s32.totalorder %s17_s10, %s739_s18  ;;  %p745_p5 = scmp.lt.s32.totalorder %s739_s18, %s739_s18 }
   0xc   :  { %p746_p6 = por %p745_p5, %p744_p4 }
   0xe   :  { %p747_p7 = pnand %p746_p6, %p740_p3 }
  0x10   :  { %750 = shalt.err (!%p747_p7)
}
  0x11   :  { %s802_s19 = smov 128   ;;  %s803_s20 = smov 8  }
  0x12   :  { %22 = dma.hbm_to_vmem [thread:$0]  %s1001_s0, 512, %s17_s10, [#allocation5], %s802_s19, %s802_s19, %s803_s20  }
  0x13   :  { %795 = dma.done.wait [#allocation5], 512  }
  0x14   :  { %796 = vsyncadd [#allocation5], 4294966784  ;;  %v67_v0 = vlaneseq  ;;  %v804_v1 = vmov 0.0|0.0   ;;  %v805_v2 = vmov 0.0   ;;  %vm806_vm0 = vmmov 0   ;;  %v32_v25 = vld [vmem:[#allocation4] sm:$0xff] }
  0x15   :  { %670 = vmatprep.subr.bf16.mxu0 %v804_v1  ;;  %694 = vmatprep.subr.bf16.mxu1 %v804_v1  ;;  %30 = vst [vmem:[#allocation2] sm:$0x1] %v805_v2  ;;  %31 = vst [vmem:[#allocation3] sm:$0x1] %v805_v2  ;;  %v807_v21 = vmov 1.0|1.0   ;;  %v49_v40 = vmul.f32 %v32_v25, %v32_v25 }
  0x16   :  { %v839_v3 = vshrl.u32 %v67_v0, 7  ;;  %v277_v4 = vand.u32 127, %v67_v0  ;;  %632 = vmatprep.mubr.msk.f32.mxu0 %vm806_vm0, %v805_v2  ;;  %667 = vmatprep.mubr.msk.f32.mxu1 %vm806_vm0, %v805_v2  ;;  %v33_v26 = vld [vmem:[#allocation4 + $0x8] sm:$0xff]  ;;  %v34_v30 = vld [vmem:[#allocation4 + $0x10] sm:$0xff]  ;;  %v35_v36 = vld [vmem:[#allocation4 + $0x18] sm:$0xff]  ;;  %s808_s0 = smov [#allocation7]  }
  0x17   :  { %v37_v31 = vadd.f32 %v33_v26, %v32_v25  ;;  %v50_v41 = vmul.f32 %v33_v26, %v33_v26  ;;  %v51_v42 = vmul.f32 %v34_v30, %v34_v30  ;;  %v52_v47 = vmul.f32 %v35_v36, %v35_v36  ;;  %s495_s23 = sshll.u32 %s808_s0, 4  ;;  %s496_s23 = int_to_ptr.vmem [resolvable:$true] %s495_s23 }
  0x18   :  { %v69_v5 = vadd.s32 8, %v839_v3  ;;  %v88_v6 = vand.u32 31, %v839_v3  ;;  %v843_v7 = vand.u32 31, %v277_v4  ;;  %v70_v8 = vadd.s32 16, %v839_v3  ;;  %s751_s24 = scalar_lea.vmem %s496_s23, 16  ;;  %s755_s25 = scalar_lea.vmem %s496_s23, 32 }
  0x19   :  { %v71_v9 = vadd.s32 24, %v839_v3  ;;  %v72_v10 = vadd.s32 32, %v839_v3  ;;  %v73_v11 = vadd.s32 40, %v839_v3  ;;  %v74_v15 = vadd.s32 48, %v839_v3  ;;  %p752_p8 = scmp.ne.s32.totalorder %s496_s23, %s751_s24  ;;  %p756_p9 = scmp.lt.s32.totalorder %s496_s23, %s496_s23 }
  0x1a   :  { %v95_v12 = vand.u32 31, %v69_v5  ;;  %vm290_vm1 = vcmp.eq.s32.totalorder %v88_v6, %v843_v7  ;;  %v102_v13 = vand.u32 31, %v70_v8  ;;  %v75_v16 = vadd.s32 56, %v839_v3  ;;  %p757_p10 = scmp.lt.s32.totalorder %s755_s25, %s751_s24 }
  0x1b   :  { %v109_v14 = vand.u32 31, %v71_v9  ;;  %v116_v18 = vand.u32 31, %v72_v10  ;;  %v123_v19 = vand.u32 31, %v73_v11  ;;  %v130_v22 = vand.u32 31, %v74_v15 }
  0x1c   :  { %vm291_vm2 = vcmp.eq.s32.totalorder %v95_v12, %v843_v7  ;;  %vm854_vm3 = vcmp.eq.s32.totalorder %v102_v13, %v843_v7  ;;  %v137_v23 = vand.u32 31, %v75_v16  ;;  %v76_v24 = vadd.s32 64, %v839_v3  ;;  %v36_v9 = vld [vmem:[#allocation2] sm:$0x1]  ;;  %v48_v15 = vld [vmem:[#allocation3] sm:$0x1]  ;;  %p758_p11 = por %p757_p10, %p756_p9 }
  0x1d   :  { %vm671_vm4 = vmpackc.low %vm291_vm2, %vm290_vm1  ;;  %vm859_vm5 = vcmp.eq.s32.totalorder %v109_v14, %v843_v7  ;;  %vm873_vm7 = vcmp.eq.s32.totalorder %v116_v18, %v843_v7  ;;  %vm878_vm8 = vcmp.eq.s32.totalorder %v123_v19, %v843_v7  ;;  %v77_v29 = vadd.s32 72, %v839_v3 }
  0x1e   :  { %672 = vmatpush3.bf16.msk.msra.mxu0 %vm671_vm4, %v807_v21  ;;  %696 = vmatpush3.bf16.msk.msra.mxu1 %vm671_vm4, %v807_v21  ;;  %vm674_vm6 = vmpackc.low %vm859_vm5, %vm854_vm3  ;;  %vm892_vm10 = vcmp.eq.s32.totalorder %v130_v22, %v843_v7  ;;  %vm897_vm11 = vcmp.eq.s32.totalorder %v137_v23, %v843_v7  ;;  %v144_v34 = vand.u32 31, %v76_v24  ;;  %v78_v35 = vadd.s32 80, %v839_v3  ;;  %p759_p12 = pnand %p758_p11, %p752_p8 }
  0x1f   :  { %673 = vmatprep.subr.bf16.mxu0 %v804_v1  ;;  %697 = vmatprep.subr.bf16.mxu1 %v804_v1  ;;  %vm677_vm9 = vmpackc.low %vm878_vm8, %vm873_vm7  ;;  %v151_v37 = vand.u32 31, %v77_v29  ;;  %v79_v38 = vadd.s32 88, %v839_v3  ;;  %v38_v39 = vadd.f32 %v37_v31, %v34_v30  ;;  %v80_v43 = vadd.s32 96, %v839_v3 }
  0x20   :  { %vm680_vm12 = vmpackc.low %vm897_vm11, %vm892_vm10  ;;  %vm913_vm13 = vcmp.eq.s32.totalorder %v144_v34, %v843_v7  ;;  %v81_v46 = vadd.s32 104, %v839_v3  ;;  %v53_v48 = vadd.f32 %v50_v41, %v49_v40  ;;  %v158_v50 = vand.u32 31, %v78_v35 }
  0x21   :  { %v39_v44 = vadd.f32 %v38_v39, %v35_v36  ;;  %vm919_vm14 = vcmp.eq.s32.totalorder %v151_v37, %v843_v7  ;;  %v165_v51 = vand.u32 31, %v79_v38  ;;  %v172_v55 = vand.u32 31, %v80_v43 }
  0x22   :  { %675 = vmatpush3.bf16.msk.msra.mxu0 %vm674_vm6, %v807_v21  ;;  %699 = vmatpush3.bf16.msk.msra.mxu1 %vm674_vm6, %v807_v21  ;;  %v54_v53 = vadd.f32 %v53_v48, %v51_v42  ;;  %vm683_vm15 = vmpackc.low %vm919_vm14, %vm913_vm13  ;;  %v82_v56 = vadd.s32 112, %v839_v3  ;;  %v83_v57 = vadd.s32 120, %v839_v3  ;;  %vm934_vm0 = vcmp.eq.s32.totalorder %v158_v50, %v843_v7 }
  0x23   :  { %676 = vmatprep.subr.bf16.mxu0 %v804_v1  ;;  %700 = vmatprep.subr.bf16.mxu1 %v804_v1  ;;  %v40_v52 = vrot.slane %v39_v44, 4  ;;  %vm939_vm1 = vcmp.eq.s32.totalorder %v165_v51, %v843_v7  ;;  %v179_v61 = vand.u32 31, %v81_v46  ;;  %vm952_vm3 = vcmp.eq.s32.totalorder %v172_v55, %v843_v7 }
  0x24   :  { %v55_v58 = vadd.f32 %v54_v53, %v52_v47  ;;  %vm686_vm2 = vmpackc.low %vm939_vm1, %vm934_vm0  ;;  %v186_v2 = vand.u32 31, %v82_v56  ;;  %v193_v6 = vand.u32 31, %v83_v57 }
  0x25   :  { %v41_v54 = vadd.f32 %v40_v52, %v39_v44  ;;  %vm957_vm4 = vcmp.eq.s32.totalorder %v179_v61, %v843_v7 }
  0x26   :  { %678 = vmatpush3.bf16.msk.msra.mxu0 %vm677_vm9, %v807_v21  ;;  %702 = vmatpush3.bf16.msk.msra.mxu1 %vm677_vm9, %v807_v21  ;;  %v56_v63 = vrot.slane %v55_v58, 4  ;;  %vm689_vm5 = vmpackc.low %vm957_vm4, %vm952_vm3  ;;  %vm304_vm6 = vcmp.eq.s32.totalorder %v186_v2, %v843_v7  ;;  %vm305_vm7 = vcmp.eq.s32.totalorder %v193_v6, %v843_v7 }
  0x27   :  { %679 = vmatprep.subr.bf16.mxu0 %v804_v1  ;;  %703 = vmatprep.subr.bf16.mxu1 %v804_v1  ;;  %v42_v62 = vrot.slane %v41_v54, 2  ;;  %vm692_vm8 = vmpackc.low %vm305_vm7, %vm304_vm6 }
  0x28   :  { %v57_v3 = vadd.f32 %v56_v63, %v55_v58 }
  0x29   :  { %v43_v0 = vadd.f32 %v42_v62, %v41_v54 }
  0x2a   :  { %681 = vmatpush3.bf16.msk.msra.mxu0 %vm680_vm12, %v807_v21  ;;  %705 = vmatpush3.bf16.msk.msra.mxu1 %vm680_vm12, %v807_v21  ;;  %v58_v10 = vrot.slane %v57_v3, 2 }
  0x2b   :  { %682 = vmatprep.subr.bf16.mxu0 %v804_v1  ;;  %706 = vmatprep.subr.bf16.mxu1 %v804_v1  ;;  %v44_v8 = vrot.slane %v43_v0, 1 }
  0x2c   :  { %v59_v12 = vadd.f32 %v58_v10, %v57_v3 }
  0x2d   :  { %v45_v11 = vadd.f32 %v44_v8, %v43_v0 }
  0x2e   :  { %684 = vmatpush3.bf16.msk.msra.mxu0 %vm683_vm15, %v807_v21  ;;  %708 = vmatpush3.bf16.msk.msra.mxu1 %vm683_vm15, %v807_v21  ;;  %v60_v14 = vrot.slane %v59_v12, 1 }
  0x2f   :  { %685 = vmatprep.subr.bf16.mxu0 %v804_v1  ;;  %709 = vmatprep.subr.bf16.mxu1 %v804_v1  ;;  %v46_v13 = vadd.f32 %v45_v11, %v36_v9 }
  0x30   :  { %v61_v16 = vadd.f32 %v60_v14, %v59_v12 }
  0x31   :  { %47 = vst [vmem:[#allocation2] sm:$0x1] %v46_v13 }
  0x32   :  { %687 = vmatpush3.bf16.msk.msra.mxu0 %vm686_vm2, %v807_v21  ;;  %711 = vmatpush3.bf16.msk.msra.mxu1 %vm686_vm2, %v807_v21  ;;  %v62_v17 = vadd.f32 %v61_v16, %v48_v15 }
  0x33   :  { %688 = vmatprep.subr.bf16.mxu0 %v804_v1  ;;  %712 = vmatprep.subr.bf16.mxu1 %v804_v1 }
  0x34   :  { %63 = vst [vmem:[#allocation3] sm:$0x1] %v62_v17 }
  0x36   :  { %690 = vmatpush3.bf16.msk.msra.mxu0 %vm689_vm5, %v807_v21  ;;  %714 = vmatpush3.bf16.msk.msra.mxu1 %vm689_vm5, %v807_v21 }
  0x37   :  { %691 = vmatprep.subr.bf16.mxu0 %v804_v1  ;;  %715 = vmatprep.subr.bf16.mxu1 %v804_v1 }
  0x38   :  { %v338_v7 = vld [vmem:[#allocation2] sm:$0x1] }
  0x3a   :  { %693 = vmatpush3.bf16.msk.msra.mxu0 %vm692_vm8, %v807_v21  ;;  %717 = vmatpush3.bf16.msk.msra.mxu1 %vm692_vm8, %v807_v21 }
  0x3b   :  { %v409_v18 = vld [vmem:[#allocation3] sm:$0x1] }
  0x3d   :  { %633 = vmatmul.mubr.f32.vlgmr.msra.gmra.mrb[0].mxu0 %v338_v7  ;;  %668 = vmatmul.mubr.f32.vlgmr.msra.gmra.mrb[0].mxu1 %v409_v18 }
 0x110   :  { %v405_v19 = vpop.f32.mrb[0].mxu0 }
 0x111   :  { %v480_v20 = vmul.f32 0.015625, %v405_v19  ;;  %v634_v22 = vpop.f32.mrb[1].mxu0 }
 0x113   :  { %485 = vst [vmem:[#allocation7] sm:$0x1] %v480_v20  ;;  %v482_v23 = vmul.f32 %v480_v20, %v480_v20 }
 0x114   :  { %762 = shalt.err (!%p759_p12)
}
 0x115   :  { %s763_s28 = scalar_lea.hbm %s1002_s1, 16 }
 0x116   :  { %p764_p13 = scmp.ne.s32.totalorder %s1002_s1, %s763_s28  ;;  %p767_p0 = scmp.lt.u32.totalorder %s763_s28, %s1002_s1 }
 0x118   :  { %p769_p1 = pnand %p767_p0, %p764_p13 }
 0x11a   :  { %772 = shalt.err (!%p769_p1)
}
 0x11b   :  { %498 = dma.vmem_to_hbm [thread:$0]  %s496_s23, 16, %s1002_s1, [#allocation6]   ;;  %v476_v1 = vpop.f32.mrb[0].mxu1 }
 0x11c   :  { %v481_v21 = vmul.f32 0.015625, %v476_v1  ;;  %v669_v24 = vpop.f32.mrb[1].mxu1  ;;  %s809_s7 = smov [#allocation8]  }
 0x11d   :  { %s505_s8 = sshll.u32 %s809_s7, 4  ;;  %s506_s8 = int_to_ptr.vmem [resolvable:$true] %s505_s8 }
 0x11e   :  { %v483_v25 = vsub.f32 %v481_v21, %v482_v23  ;;  %s773_s9 = scalar_lea.vmem %s506_s8, 16  ;;  %s777_s10 = scalar_lea.vmem %s506_s8, 32 }
 0x11f   :  { %p774_p2 = scmp.ne.s32.totalorder %s506_s8, %s773_s9  ;;  %p778_p3 = scmp.lt.s32.totalorder %s506_s8, %s506_s8 }
 0x120   :  { %v484_v26 = vmax.f32 %v483_v25, 0.0  ;;  %p779_p4 = scmp.lt.s32.totalorder %s777_s10, %s773_s9 }
 0x122   :  { %v486_v27 = vadd.f32 1e-05, %v484_v26  ;;  %p780_p5 = por %p779_p4, %p778_p3 }
 0x124   :  { %727 = vrsqrt.f32 %v486_v27  ;;  %p781_p6 = pnand %p780_p5, %p774_p2 }
 0x12e   :  { %v728_v28 = vpop.eup %727 }
 0x12f   :  { %488 = vst [vmem:[#allocation8] sm:$0x1] %v728_v28 }
 0x130   :  { %784 = shalt.err (!%p781_p6)
}
 0x131   :  { %s785_s12 = scalar_lea.hbm %s1003_s2, 16 }
 0x132   :  { %p786_p7 = scmp.ne.s32.totalorder %s1003_s2, %s785_s12  ;;  %p789_p8 = scmp.lt.u32.totalorder %s785_s12, %s1003_s2 }
 0x134   :  { %p791_p9 = pnand %p789_p8, %p786_p7 }
 0x136   :  { %794 = shalt.err (!%p791_p9)
}
 0x137   :  { %508 = dma.vmem_to_hbm [thread:$0]  %s506_s8, 16, %s1003_s2, [#allocation9]  }
 0x138   :  { %797 = dma.done.wait [#allocation6], 16  }
 0x139   :  { %798 = vsyncadd [#allocation6], 4294967280 }
 0x13a   :  { %799 = dma.done.wait [#allocation9], 16  }
 0x13b   :  { %800 = vsyncadd [#allocation9], 4294967280 }
 0x13c   :  { %515 = vsyncpa [#allocation5], 1 }
 0x13d   :  { %516 = vsyncpa [#allocation6], 1 }
 0x13e   :  { %517 = vsyncpa [#allocation9], 1 }

</bundles_post_ra>
